<compile_context>
chip_gen: v7x
topology: tpu7x:2x2x1
jax: 0.10.0
libtpu: 0.0.40
codegen_flags: <defaults>
</compile_context>

<pallas_src>
import jax
import jax.numpy as jnp
import numpy as np
from jax.experimental import pallas as pl
from jax.experimental.pallas import tpu as pltpu

B, S, E = 2, 8, 32          # batch, max_seq_len, input_size
H = 8                       # n_head (PyTorch default)
DH = E // H                 # head dim
FEED = 4 * E                # feed_dim default = 4 * input_size
EPS = 1e-5                  # nn.LayerNorm default eps

# row offsets inside packed slab2 (lane width = E)
R_B2 = FEED                 # 128  b2
R_G1 = FEED + 1             # 129  LN1 gamma
R_BE1 = FEED + 2            # 130  LN1 beta
R_G2 = FEED + 3             # 131  LN2 gamma
R_BE2 = FEED + 4            # 132  LN2 beta
R_MEH = FEED + 8            # 136  m_eh  (E, E)  head-select (cols >= H zero)
R_MHE = R_MEH + E           # 168  m_he  (E, E)  head-expand (rows >= H zero)
R_MQ0 = R_MHE + E           # 200  M_q0  (B*S, B*S) broadcast first query row of each segment
R_MSEG = R_MQ0 + B * S      # 216  M_seg (B*S, B*S) per-segment sum broadcast
R_SEL = R_MSEG + B * S      # 232  sel_first (B, B*S) rows, then seg_sum (B, B*S) rows


def transformer_first_kernel(x_ref, w1_ref, w2_ref, o_ref):
    f32 = jnp.float32

    # ---- static slab views (compile-time slices, single DMA per input) ----
    x_aug = x_ref[...]                                     # (B*S, E+1), col E is ones
    x = x_aug[:, 0:E]                                      # residual path

    w_qkv = w1_ref[:, 0:3 * E]                             # (E+1, 3E) bias row folded
    wo = w1_ref[0:E, 3 * E:4 * E]                          # (E, E)
    bo = w1_ref[E:E + 1, 3 * E:4 * E]                      # (1, E)
    wf1 = w1_ref[0:E, 4 * E:4 * E + FEED]                  # (E, FEED)
    bf1 = w1_ref[E:E + 1, 4 * E:4 * E + FEED]              # (1, FEED)

    wf2 = w2_ref[0:FEED, :]                                # (FEED, E)
    bf2 = w2_ref[R_B2:R_B2 + 1, :]                         # (1, E)
    g1 = w2_ref[R_G1:R_G1 + 1, :]
    be1 = w2_ref[R_BE1:R_BE1 + 1, :]
    g2 = w2_ref[R_G2:R_G2 + 1, :]
    be2 = w2_ref[R_BE2:R_BE2 + 1, :]
    m_eh = w2_ref[R_MEH:R_MEH + E, :]                      # (E, E)
    m_he = w2_ref[R_MHE:R_MHE + E, :]                      # (E, E)
    m_q0 = w2_ref[R_MQ0:R_MQ0 + B * S, 0:B * S]            # (B*S, B*S)
    m_seg = w2_ref[R_MSEG:R_MSEG + B * S, 0:B * S]         # (B*S, B*S)
    sel_first = w2_ref[R_SEL:R_SEL + B, 0:B * S]           # (B, B*S)
    seg_sum = w2_ref[R_SEL + B:R_SEL + 2 * B, 0:B * S]     # (B, B*S)

    # ---- fused QKV projection (scale and bias folded at pack/call time) ----
    qkv = jnp.dot(x_aug, w_qkv, preferred_element_type=f32)          # (B*S, 3E)
    q = qkv[:, 0:E]
    k = qkv[:, E:2 * E]
    v = qkv[:, 2 * E:3 * E]

    # ---- attention for query row 0 of each batch, vectorized over B ----
    # broadcast each segment's first query row to all of its S key rows (MXU)
    q0b = jnp.dot(m_q0, q, preferred_element_type=f32)               # (B*S, E)
    # per-head scores live in columns < H of an E-wide array (padding cols are 0)
    scores = jnp.dot(k * q0b, m_eh, preferred_element_type=f32)      # (B*S, E)
    # a single global per-column max is a constant within each segment's
    # softmax group, so the softmax is unchanged; it only assumes the column
    # score spread across B*S rows stays within exp's f32 range.
    p = jnp.exp(scores - jnp.max(scores, axis=0, keepdims=True))
    # per-segment denominator, broadcast back to every row, on the MXU
    denom = jnp.dot(m_seg, p, preferred_element_type=f32)
    pn = p * pl.reciprocal(denom, approx=True)
    # expand per-head probabilities onto embedding lanes; padded rows of m_he
    # are zero so the junk columns of pn contribute nothing
    p_exp = jnp.dot(pn, m_he, preferred_element_type=f32)            # (B*S, E)
    # per-segment context + residual-row selection as matmuls (MXU, not XLU)
    attn = jnp.dot(seg_sum, p_exp * v, preferred_element_type=f32)   # (B, E)
    x0 = jnp.dot(sel_first, x, preferred_element_type=f32)           # (B, E)

    # output projection (bias = single-vreg VPU add on 2 rows)
    attn = jnp.dot(attn, wo, preferred_element_type=f32) + bo

    # ---- residual + LayerNorm 1 (dropout = identity in eval mode) ----
    y = x0 + attn
    mu = jnp.mean(y, axis=-1, keepdims=True)
    var = jnp.mean((y - mu) ** 2, axis=-1, keepdims=True)
    y = (y - mu) * jax.lax.rsqrt(var + EPS) * g1 + be1

    # ---- feed-forward on the B surviving rows ----
    hid = jnp.maximum(jnp.dot(y, wf1, preferred_element_type=f32) + bf1, 0.0)
    ff = jnp.dot(hid, wf2, preferred_element_type=f32) + bf2

    # ---- residual + LayerNorm 2 ----
    z = y + ff
    mu2 = jnp.mean(z, axis=-1, keepdims=True)
    var2 = jnp.mean((z - mu2) ** 2, axis=-1, keepdims=True)
    z = (z - mu2) * jax.lax.rsqrt(var2 + EPS) * g2 + be2

    o_ref[...] = z.astype(o_ref.dtype)


def pack_params(params):
    """One-time weight/constant packing into two slabs (outside per-call path)."""
    (wq_t, wk_t, wv_t, bq, bk, bv, wo_t, bo,
     g1, be1, w1_t, bf1, w2_t, bf2, g2, be2) = params
    scale = 1.0 / (DH ** 0.5)

    # slab 1: (E+1, 4E+FEED) = [Wqkv;bqkv | Wo;bo | W1;b1], Wq/bq pre-scaled
    blk_qkv = jnp.concatenate(
        [jnp.concatenate([wq_t * scale, wk_t, wv_t], axis=1),
         jnp.concatenate([bq * scale, bk, bv], axis=0)[None, :]], axis=0)
    blk_o = jnp.concatenate([wo_t, bo[None, :]], axis=0)
    blk_1 = jnp.concatenate([w1_t, bf1[None, :]], axis=0)
    slab1 = jnp.concatenate([blk_qkv, blk_o, blk_1], axis=1).astype(jnp.float32)

    # slab 2: (240, E) = W2 + bias/LN vectors + attention selector constants
    d = np.arange(E)
    h = np.arange(E)  # heads padded to E lanes; entries for h >= H are zero
    m_eh = (d[:, None] // DH == h[None, :]).astype(np.float32)        # (E, E)
    m_he = (h[:, None] == d[None, :] // DH).astype(np.float32)        # (E, E)
    r = np.arange(B * S)
    m_q0 = (r[None, :] == (r[:, None] // S) * S).astype(np.float32)   # (B*S, B*S)
    m_seg = (r[:, None] // S == r[None, :] // S).astype(np.float32)   # (B*S, B*S)
    sel_block = np.zeros((8, B * S), np.float32)
    sel_block[0:B] = (r[None, :] == np.arange(B)[:, None] * S)        # sel_first
    sel_block[B:2 * B] = (r[None, :] // S == np.arange(B)[:, None])   # seg_sum
    pad = lambda a: np.pad(a, ((0, 0), (0, E - a.shape[1])))

    vec_rows = jnp.concatenate(
        [bf2[None, :], g1[None, :], be1[None, :], g2[None, :], be2[None, :],
         jnp.zeros((3, E), jnp.float32)], axis=0)                      # rows 128..135
    slab2 = jnp.concatenate(
        [w2_t, vec_rows,
         jnp.asarray(m_eh), jnp.asarray(m_he),
         jnp.asarray(pad(m_q0)), jnp.asarray(pad(m_seg)),
         jnp.asarray(pad(sel_block))], axis=0).astype(jnp.float32)     # (240, E)
    return slab1, slab2


def transformer_layer(x, packed, out_type='first'):
    if out_type != 'first':
        # TODO(synk): out_type='all' (full (B,S,E) output) is not wired into this kernel.
        raise NotImplementedError("only out_type='first' is implemented")
    slab1, slab2 = packed

    # input prep: fold batch into rows and append a ones column so the QKV
    # bias rides inside the single (B*S, E+1) @ (E+1, 3E) matmul.
    x2 = x.reshape(B * S, E)
    x_aug = jnp.concatenate([x2, jnp.ones((B * S, 1), x2.dtype)], axis=1)

    vmem = pl.BlockSpec(memory_space=pltpu.MemorySpace.VMEM)
    # Gridless call: whole arrays DMA'd to VMEM once, no pipeline machinery.
    return pl.pallas_call(
        transformer_first_kernel,
        out_shape=jax.ShapeDtypeStruct((B, E), x.dtype),
        in_specs=[vmem, vmem, vmem],
        out_specs=vmem,
    )(x_aug, slab1, slab2)


# ---------------- pure-JAX reference (for correctness check) ----------------
def _layer_norm(x, g, b):
    mu = jnp.mean(x, axis=-1, keepdims=True)
    var = jnp.mean((x - mu) ** 2, axis=-1, keepdims=True)
    return (x - mu) / jnp.sqrt(var + EPS) * g + b


def reference(x, params, out_type='first'):
    (wq_t, wk_t, wv_t, bq, bk, bv, wo_t, bo,
     g1, be1, w1_t, bf1, w2_t, bf2, g2, be2) = params
    q = x @ wq_t + bq
    k = x @ wk_t + bk
    v = x @ wv_t + bv
    qh = q.reshape(B, S, H, DH).transpose(0, 2, 1, 3)
    kh = k.reshape(B, S, H, DH).transpose(0, 2, 1, 3)
    vh = v.reshape(B, S, H, DH).transpose(0, 2, 1, 3)
    s = jnp.einsum('bhqd,bhkd->bhqk', qh * (DH ** -0.5), kh)
    p = jax.nn.softmax(s, axis=-1)
    ctx = jnp.einsum('bhqk,bhkd->bhqd', p, vh)
    ctx = ctx.transpose(0, 2, 1, 3).reshape(B, S, E)
    attn = ctx @ wo_t + bo
    y = _layer_norm(x + attn, g1, be1)
    ff = jax.nn.relu(y @ w1_t + bf1) @ w2_t + bf2
    z = _layer_norm(y + ff, g2, be2)
    if out_type == 'first':
        return z[:, 0, :]
    return z


def make_params(key):
    ks = jax.random.split(key, 10)
    sc = 0.1
    # nn.MultiheadAttention: in_proj (3E, E) applied as x @ W.T -> store W.T
    wq_t = sc * jax.random.normal(ks[0], (E, E), jnp.float32)
    wk_t = sc * jax.random.normal(ks[1], (E, E), jnp.float32)
    wv_t = sc * jax.random.normal(ks[2], (E, E), jnp.float32)
    bq, bk, bv = [sc * jax.random.normal(k, (E,), jnp.float32)
                  for k in jax.random.split(ks[3], 3)]
    wo_t = sc * jax.random.normal(ks[4], (E, E), jnp.float32)   # out_proj.weight.T
    bo = sc * jax.random.normal(ks[5], (E,), jnp.float32)
    g1 = jnp.ones((E,), jnp.float32)
    be1 = jnp.zeros((E,), jnp.float32)
    w1_t = sc * jax.random.normal(ks[6], (E, FEED), jnp.float32)  # linear_1.weight.T
    bf1 = sc * jax.random.normal(ks[7], (FEED,), jnp.float32)
    w2_t = sc * jax.random.normal(ks[8], (FEED, E), jnp.float32)  # linear_2.weight.T
    bf2 = sc * jax.random.normal(ks[9], (E,), jnp.float32)
    g2 = jnp.ones((E,), jnp.float32)
    be2 = jnp.zeros((E,), jnp.float32)
    return (wq_t, wk_t, wv_t, bq, bk, bv, wo_t, bo,
            g1, be1, w1_t, bf1, w2_t, bf2, g2, be2)


if __name__ == "__main__":
    key = jax.random.PRNGKey(0)
    kx, kp = jax.random.split(key)
    x = jax.random.normal(kx, (B, S, E), jnp.float32)     # query (B, S, E)
    params = make_params(kp)
    packed = pack_params(params)                          # one-time packing

    out = transformer_layer(x, packed, out_type='first')  # (B, E)
    out = jax.block_until_ready(out)

    ref = reference(x, params, out_type='first')
    assert out.shape == (B, E), out.shape
    # tolerance loosened vs exact f32 to cover the approximate EUP reciprocal
    # used in the softmax denominator
    assert jnp.allclose(out, ref, rtol=5e-3, atol=5e-3), \
        float(jnp.max(jnp.abs(out - ref)))
    print("KERNEL_OK")
</pallas_src>

<mosaic_0001>
module attributes {stable_mosaic.version = 11 : i64} {
  func.func @transformer_first_kernel(%arg0: memref<16x33xf32, #tpu.memory_space<vmem>>, %arg1: memref<33x256xf32, #tpu.memory_space<vmem>>, %arg2: memref<240x32xf32, #tpu.memory_space<vmem>>, %arg3: memref<2x32xf32, #tpu.memory_space<vmem>>) attributes {dimension_semantics = [], scalar_prefetch = 0 : i64, scratch_operands = 0 : i64, tpu.core_type = #tpu.core_type<tc>} {
    %c0 = arith.constant 0 : index
    %c0_0 = arith.constant 0 : index
    %0 = vector.load %arg0[%c0, %c0_0] : memref<16x33xf32, #tpu.memory_space<vmem>>, vector<16x33xf32>
    %1 = vector.extract_strided_slice %0 {offsets = [0, 0], sizes = [16, 32], strides = [1, 1]} : vector<16x33xf32> to vector<16x32xf32>
    %c0_1 = arith.constant 0 : index
    %c0_2 = arith.constant 0 : index
    %2 = vector.load %arg1[%c0_1, %c0_2] : memref<33x256xf32, #tpu.memory_space<vmem>>, vector<33x96xf32>
    %c0_3 = arith.constant 0 : index
    %c96 = arith.constant 96 : index
    %3 = vector.load %arg1[%c0_3, %c96] : memref<33x256xf32, #tpu.memory_space<vmem>>, vector<32x32xf32>
    %c32 = arith.constant 32 : index
    %c96_4 = arith.constant 96 : index
    %4 = vector.load %arg1[%c32, %c96_4] : memref<33x256xf32, #tpu.memory_space<vmem>>, vector<1x32xf32>
    %c0_5 = arith.constant 0 : index
    %c128 = arith.constant 128 : index
    %5 = vector.load %arg1[%c0_5, %c128] : memref<33x256xf32, #tpu.memory_space<vmem>>, vector<32x128xf32>
    %c32_6 = arith.constant 32 : index
    %c128_7 = arith.constant 128 : index
    %6 = vector.load %arg1[%c32_6, %c128_7] : memref<33x256xf32, #tpu.memory_space<vmem>>, vector<1x128xf32>
    %c0_8 = arith.constant 0 : index
    %c0_9 = arith.constant 0 : index
    %7 = vector.load %arg2[%c0_8, %c0_9] : memref<240x32xf32, #tpu.memory_space<vmem>>, vector<128x32xf32>
    %c128_10 = arith.constant 128 : index
    %c0_11 = arith.constant 0 : index
    %8 = vector.load %arg2[%c128_10, %c0_11] : memref<240x32xf32, #tpu.memory_space<vmem>>, vector<1x32xf32>
    %c129 = arith.constant 129 : index
    %c0_12 = arith.constant 0 : index
    %9 = vector.load %arg2[%c129, %c0_12] : memref<240x32xf32, #tpu.memory_space<vmem>>, vector<1x32xf32>
    %c130 = arith.constant 130 : index
    %c0_13 = arith.constant 0 : index
    %10 = vector.load %arg2[%c130, %c0_13] : memref<240x32xf32, #tpu.memory_space<vmem>>, vector<1x32xf32>
    %c131 = arith.constant 131 : index
    %c0_14 = arith.constant 0 : index
    %11 = vector.load %arg2[%c131, %c0_14] : memref<240x32xf32, #tpu.memory_space<vmem>>, vector<1x32xf32>
    %c132 = arith.constant 132 : index
    %c0_15 = arith.constant 0 : index
    %12 = vector.load %arg2[%c132, %c0_15] : memref<240x32xf32, #tpu.memory_space<vmem>>, vector<1x32xf32>
    %c136 = arith.constant 136 : index
    %c0_16 = arith.constant 0 : index
    %13 = vector.load %arg2[%c136, %c0_16] : memref<240x32xf32, #tpu.memory_space<vmem>>, vector<32x32xf32>
    %c168 = arith.constant 168 : index
    %c0_17 = arith.constant 0 : index
    %14 = vector.load %arg2[%c168, %c0_17] : memref<240x32xf32, #tpu.memory_space<vmem>>, vector<32x32xf32>
    %c200 = arith.constant 200 : index
    %c0_18 = arith.constant 0 : index
    %15 = vector.load %arg2[%c200, %c0_18] : memref<240x32xf32, #tpu.memory_space<vmem>>, vector<16x16xf32>
    %c216 = arith.constant 216 : index
    %c0_19 = arith.constant 0 : index
    %16 = vector.load %arg2[%c216, %c0_19] : memref<240x32xf32, #tpu.memory_space<vmem>>, vector<16x16xf32>
    %c232 = arith.constant 232 : index
    %c0_20 = arith.constant 0 : index
    %17 = vector.load %arg2[%c232, %c0_20] : memref<240x32xf32, #tpu.memory_space<vmem>>, vector<2x16xf32>
    %c234 = arith.constant 234 : index
    %c0_21 = arith.constant 0 : index
    %18 = vector.load %arg2[%c234, %c0_21] : memref<240x32xf32, #tpu.memory_space<vmem>>, vector<2x16xf32>
    %cst = arith.constant dense<0.000000e+00> : vector<16x96xf32>
    %19 = tpu.matmul %0, %2, %cst {dimension_numbers = #tpu.dot_dimension_numbers<[1], [0], [0], [1], [0, 0, 1, 1], [], []>} : vector<16x33xf32>, vector<33x96xf32>, vector<16x96xf32> -> vector<16x96xf32>
    %20 = vector.extract_strided_slice %19 {offsets = [0, 0], sizes = [16, 32], strides = [1, 1]} : vector<16x96xf32> to vector<16x32xf32>
    %21 = vector.extract_strided_slice %19 {offsets = [0, 32], sizes = [16, 32], strides = [1, 1]} : vector<16x96xf32> to vector<16x32xf32>
    %22 = vector.extract_strided_slice %19 {offsets = [0, 64], sizes = [16, 32], strides = [1, 1]} : vector<16x96xf32> to vector<16x32xf32>
    %cst_22 = arith.constant dense<0.000000e+00> : vector<16x32xf32>
    %23 = tpu.matmul %15, %20, %cst_22 {dimension_numbers = #tpu.dot_dimension_numbers<[1], [0], [0], [1], [0, 0, 1, 1], [], []>} : vector<16x16xf32>, vector<16x32xf32>, vector<16x32xf32> -> vector<16x32xf32>
    %24 = arith.mulf %21, %23 : vector<16x32xf32>
    %cst_23 = arith.constant dense<0.000000e+00> : vector<16x32xf32>
    %25 = tpu.matmul %24, %13, %cst_23 {dimension_numbers = #tpu.dot_dimension_numbers<[1], [0], [0], [1], [0, 0, 1, 1], [], []>} : vector<16x32xf32>, vector<32x32xf32>, vector<16x32xf32> -> vector<16x32xf32>
    %cst_24 = arith.constant dense<0xFF800000> : vector<32xf32>
    %26 = vector.multi_reduction <maximumf>, %25, %cst_24 [0] : vector<16x32xf32> to vector<32xf32>
    %27 = vector.shape_cast %26 : vector<32xf32> to vector<1x32xf32>
    %28 = vector.broadcast %27 : vector<1x32xf32> to vector<16x32xf32>
    %29 = arith.subf %25, %28 : vector<16x32xf32>
    %30 = math.exp %29 : vector<16x32xf32>
    %cst_25 = arith.constant dense<0.000000e+00> : vector<16x32xf32>
    %31 = tpu.matmul %16, %30, %cst_25 {dimension_numbers = #tpu.dot_dimension_numbers<[1], [0], [0], [1], [0, 0, 1, 1], [], []>} : vector<16x16xf32>, vector<16x32xf32>, vector<16x32xf32> -> vector<16x32xf32>
    %32 = tpu.reciprocal %31 {approx = true} : vector<16x32xf32> -> vector<16x32xf32>
    %33 = arith.mulf %30, %32 : vector<16x32xf32>
    %cst_26 = arith.constant dense<0.000000e+00> : vector<16x32xf32>
    %34 = tpu.matmul %33, %14, %cst_26 {dimension_numbers = #tpu.dot_dimension_numbers<[1], [0], [0], [1], [0, 0, 1, 1], [], []>} : vector<16x32xf32>, vector<32x32xf32>, vector<16x32xf32> -> vector<16x32xf32>
    %35 = arith.mulf %34, %22 : vector<16x32xf32>
    %cst_27 = arith.constant dense<0.000000e+00> : vector<2x32xf32>
    %36 = tpu.matmul %18, %35, %cst_27 {dimension_numbers = #tpu.dot_dimension_numbers<[1], [0], [0], [1], [0, 0, 1, 1], [], []>} : vector<2x16xf32>, vector<16x32xf32>, vector<2x32xf32> -> vector<2x32xf32>
    %cst_28 = arith.constant dense<0.000000e+00> : vector<2x32xf32>
    %37 = tpu.matmul %17, %1, %cst_28 {dimension_numbers = #tpu.dot_dimension_numbers<[1], [0], [0], [1], [0, 0, 1, 1], [], []>} : vector<2x16xf32>, vector<16x32xf32>, vector<2x32xf32> -> vector<2x32xf32>
    %cst_29 = arith.constant dense<0.000000e+00> : vector<2x32xf32>
    %38 = tpu.matmul %36, %3, %cst_29 {dimension_numbers = #tpu.dot_dimension_numbers<[1], [0], [0], [1], [0, 0, 1, 1], [], []>} : vector<2x32xf32>, vector<32x32xf32>, vector<2x32xf32> -> vector<2x32xf32>
    %39 = vector.broadcast %4 : vector<1x32xf32> to vector<2x32xf32>
    %40 = arith.addf %38, %39 : vector<2x32xf32>
    %41 = arith.addf %37, %40 : vector<2x32xf32>
    %cst_30 = arith.constant dense<0.000000e+00> : vector<2xf32>
    %42 = vector.multi_reduction <add>, %41, %cst_30 [1] : vector<2x32xf32> to vector<2xf32>
    %43 = vector.shape_cast %42 : vector<2xf32> to vector<2x1xf32>
    %cst_31 = arith.constant 3.200000e+01 : f32
    %44 = vector.broadcast %cst_31 : f32 to vector<2x1xf32>
    %45 = arith.divf %43, %44 : vector<2x1xf32>
    %46 = vector.broadcast %45 : vector<2x1xf32> to vector<2x32xf32>
    %47 = arith.subf %41, %46 : vector<2x32xf32>
    %48 = arith.mulf %47, %47 : vector<2x32xf32>
    %cst_32 = arith.constant dense<0.000000e+00> : vector<2xf32>
    %49 = vector.multi_reduction <add>, %48, %cst_32 [1] : vector<2x32xf32> to vector<2xf32>
    %50 = vector.shape_cast %49 : vector<2xf32> to vector<2x1xf32>
    %cst_33 = arith.constant 3.200000e+01 : f32
    %51 = vector.broadcast %cst_33 : f32 to vector<2x1xf32>
    %52 = arith.divf %50, %51 : vector<2x1xf32>
    %53 = vector.broadcast %45 : vector<2x1xf32> to vector<2x32xf32>
    %54 = arith.subf %41, %53 : vector<2x32xf32>
    %cst_34 = arith.constant 9.99999974E-6 : f32
    %55 = vector.broadcast %cst_34 : f32 to vector<2x1xf32>
    %56 = arith.addf %52, %55 : vector<2x1xf32>
    %57 = math.rsqrt %56 : vector<2x1xf32>
    %58 = vector.broadcast %57 : vector<2x1xf32> to vector<2x32xf32>
    %59 = arith.mulf %54, %58 : vector<2x32xf32>
    %60 = vector.broadcast %9 : vector<1x32xf32> to vector<2x32xf32>
    %61 = arith.mulf %59, %60 : vector<2x32xf32>
    %62 = vector.broadcast %10 : vector<1x32xf32> to vector<2x32xf32>
    %63 = arith.addf %61, %62 : vector<2x32xf32>
    %cst_35 = arith.constant dense<0.000000e+00> : vector<2x128xf32>
    %64 = tpu.matmul %63, %5, %cst_35 {dimension_numbers = #tpu.dot_dimension_numbers<[1], [0], [0], [1], [0, 0, 1, 1], [], []>} : vector<2x32xf32>, vector<32x128xf32>, vector<2x128xf32> -> vector<2x128xf32>
    %65 = vector.broadcast %6 : vector<1x128xf32> to vector<2x128xf32>
    %66 = arith.addf %64, %65 : vector<2x128xf32>
    %cst_36 = arith.constant 0.000000e+00 : f32
    %67 = vector.broadcast %cst_36 : f32 to vector<2x128xf32>
    %68 = arith.maximumf %66, %67 : vector<2x128xf32>
    %cst_37 = arith.constant dense<0.000000e+00> : vector<2x32xf32>
    %69 = tpu.matmul %68, %7, %cst_37 {dimension_numbers = #tpu.dot_dimension_numbers<[1], [0], [0], [1], [0, 0, 1, 1], [], []>} : vector<2x128xf32>, vector<128x32xf32>, vector<2x32xf32> -> vector<2x32xf32>
    %70 = vector.broadcast %8 : vector<1x32xf32> to vector<2x32xf32>
    %71 = arith.addf %69, %70 : vector<2x32xf32>
    %72 = arith.addf %63, %71 : vector<2x32xf32>
    %cst_38 = arith.constant dense<0.000000e+00> : vector<2xf32>
    %73 = vector.multi_reduction <add>, %72, %cst_38 [1] : vector<2x32xf32> to vector<2xf32>
    %74 = vector.shape_cast %73 : vector<2xf32> to vector<2x1xf32>
    %cst_39 = arith.constant 3.200000e+01 : f32
    %75 = vector.broadcast %cst_39 : f32 to vector<2x1xf32>
    %76 = arith.divf %74, %75 : vector<2x1xf32>
    %77 = vector.broadcast %76 : vector<2x1xf32> to vector<2x32xf32>
    %78 = arith.subf %72, %77 : vector<2x32xf32>
    %79 = arith.mulf %78, %78 : vector<2x32xf32>
    %cst_40 = arith.constant dense<0.000000e+00> : vector<2xf32>
    %80 = vector.multi_reduction <add>, %79, %cst_40 [1] : vector<2x32xf32> to vector<2xf32>
    %81 = vector.shape_cast %80 : vector<2xf32> to vector<2x1xf32>
    %cst_41 = arith.constant 3.200000e+01 : f32
    %82 = vector.broadcast %cst_41 : f32 to vector<2x1xf32>
    %83 = arith.divf %81, %82 : vector<2x1xf32>
    %84 = vector.broadcast %76 : vector<2x1xf32> to vector<2x32xf32>
    %85 = arith.subf %72, %84 : vector<2x32xf32>
    %cst_42 = arith.constant 9.99999974E-6 : f32
    %86 = vector.broadcast %cst_42 : f32 to vector<2x1xf32>
    %87 = arith.addf %83, %86 : vector<2x1xf32>
    %88 = math.rsqrt %87 : vector<2x1xf32>
    %89 = vector.broadcast %88 : vector<2x1xf32> to vector<2x32xf32>
    %90 = arith.mulf %85, %89 : vector<2x32xf32>
    %91 = vector.broadcast %11 : vector<1x32xf32> to vector<2x32xf32>
    %92 = arith.mulf %90, %91 : vector<2x32xf32>
    %93 = vector.broadcast %12 : vector<1x32xf32> to vector<2x32xf32>
    %94 = arith.addf %92, %93 : vector<2x32xf32>
    %c0_43 = arith.constant 0 : index
    %c0_44 = arith.constant 0 : index
    %95 = vector.load %arg3[%c0_43, %c0_44] : memref<2x32xf32, #tpu.memory_space<vmem>>, vector<2x32xf32>
    tpu.vector_store %arg3[%c0_43, %c0_44], %94 {strides = array<i32>} : memref<2x32xf32, #tpu.memory_space<vmem>>, vector<2x32xf32>,
    return
  }
}

</mosaic_0001>

<bundles_post_ra>
// kernel: tpu_custom_call.1
= control target key start
LH: loop header
LB: loop body
LE: loop exit
PB: predicated region body
PF: predicated region fallthrough
CT: control target
= control target key end

     0   :  { %vm63_vm0 = vcmask 269312   ;;  %s1551_s0 = inlined_call_operand.vmem [shape: f32[16,33], index: 0, kind: input, shape index: {}]   ;;  %s1552_s1 = inlined_call_operand.vmem [shape: f32[33,256], index: 1, kind: input, shape index: {}]   ;;  %s1553_s2 = inlined_call_operand.vmem [shape: f32[240,32], index: 2, kind: input, shape index: {}]   ;;  %s1554_s3 = inlined_call_operand.hbm [shape: f32[2,32], index: 3, kind: output, shape index: {}]  }
   0x1   :  { %v17_v0 = vld [vmem:[%s1552_s1] sm:$0xff]  ;;  %v18_v1 = vld [vmem:[%s1552_s1 + $0x10] sm:$0xff]  ;;  %v1352_v8 = vld [vmem:[%s1551_s0 + $0x8] sm:$0xff] }
   0x2   :  { %v1335_v2 = vld [vmem:[%s1552_s1 + $0x20] sm:$0xff]  ;;  %v1253_v3 = vpack.i.bf16 %v18_v1, %v17_v0  ;;  %v1169_v4 = vpack.c.bf16 %v18_v1, %v17_v0  ;;  %v1340_v5 = vld [vmem:[%s1552_s1 + $0x30] sm:$0xff] }
   0x3   :  { %v1345_v6 = vld [vmem:[%s1551_s0] sm:$0xff]  ;;  %v1173_v7 = vpack.c.bf16 %v1340_v5, %v1335_v2 }
   0x4   :  { %1059 = vmatprep.mubr.msk.f32.mxu0 %vm63_vm0, %v1345_v6 }
   0x5   :  { %8 = vsyncpa [#allocation3], 0  ;;  %1170 = vmatprep.subr.bf16.mxu0 %v1169_v4  ;;  %v1211_v9 = vpack.c.bf16 %v1352_v8, %v1345_v6  ;;  %v21_v10 = vld [vmem:[%s1552_s1 + $0x40] sm:$0x1]  ;;  %vm70_vm1 = vcmask 1040384   ;;  %v57_v11 = vld [vmem:[%s1553_s2 + $0xc8] sm:$0xff]  ;;  %v1258_v0 = vpack.i.bf16 %v1340_v5, %v1335_v2 }
   0x6   :  { %1172 = vmatpush3.bf16.msra.mxu0 %v1169_v4  ;;  %vm149_vm2 = vcmask 130048   ;;  %v58_v15 = vld [vmem:[%s1553_s2 + $0xd0] sm:$0xff]  ;;  %v49_v16 = vld [vmem:[%s1553_s2 + $0x88] sm:$0xff]  ;;  %s1299_s6 = smov 32   ;;  %s1300_s7 = smov 64   ;;  %v51_v21 = vld [vmem:[%s1553_s2 + $0x98] sm:$0xff] }
   0x7   :  { %1174 = vmatprep.subr.bf16.mxu0 %v1173_v7  ;;  %1066 = vmatprep.mubr.msk.f32.mxu1 %vm149_vm2, %v57_v11  ;;  %v50_v17 = vld [vmem:[%s1553_s2 + $0x90] sm:$0xff]  ;;  %v52_v22 = vld [vmem:[%s1553_s2 + $0xa0] sm:$0xff]  ;;  %s1301_s12 = smov 96   ;;  %vm247_vm3 = vcmask 261120   ;;  %v59_v30 = vld [vmem:[%s1553_s2 + $0xd8] sm:$0xff]  ;;  %v1302_v62 = vmov 0.0|0.0  }
   0x8   :  { %v1181_v19 = vpack.c.bf16 %v50_v17, %v49_v16  ;;  %v1185_v23 = vpack.c.bf16 %v52_v22, %v51_v21  ;;  %v60_v49 = vld [vmem:[%s1553_s2 + $0xe0] sm:$0xff]  ;;  %v53_v50 = vld [vmem:[%s1553_s2 + $0xa8] sm:$0xff]  ;;  %v54_v51 = vld [vmem:[%s1553_s2 + $0xb0] sm:$0xff]  ;;  %vm1303_vm4 = vmmov 0   ;;  %v1304_v63 = vmov 0.0   ;;  %s1305_s0 = smov [#allocation2]  }
   0x9   :  { %v1193_v52 = vpack.c.bf16 %v54_v51, %v53_v50  ;;  %v55_v53 = vld [vmem:[%s1553_s2 + $0xb8] sm:$0xff]  ;;  %v56_v54 = vld [vmem:[%s1553_s2 + $0xc0] sm:$0xff]  ;;  %v62_v17 = vld [vmem:[%s1553_s2 + $0xea] sm:$0x3]  ;;  %vm757_vm5 = vcmask 254976   ;;  %s961_s26 = sshll.u32 %s1305_s0, 4  ;;  %s962_s26 = int_to_ptr.vmem [resolvable:$true] %s961_s26 }
   0xa   :  { %1176 = vmatpush3.bf16.msra.mxu0 %v1173_v7  ;;  %v1197_v55 = vpack.c.bf16 %v56_v54, %v55_v53  ;;  %v31_v50 = vld [vmem:[%s1553_s2 + $0x18] sm:$0xff]  ;;  %v33_v53 = vld [vmem:[%s1553_s2 + $0x28] sm:$0xff]  ;;  %s1275_s27 = scalar_lea.vmem %s962_s26, 32  ;;  %p1280_p1 = scmp.lt.s32.totalorder %s962_s26, %s962_s26 }
   0xb   :  { %1057 = vmatprep.subr.msk.mxu0 %vm70_vm1, %v21_v10  ;;  %p1276_p0 = scmp.ne.s32.totalorder %s962_s26, %s1275_s27  ;;  %p1281_p2 = scmp.lt.s32.totalorder %s1275_s27, %s1275_s27 }
   0xd   :  { %p1282_p3 = por %p1281_p2, %p1280_p1 }
   0xe   :  { %1058 = vmatpush3.msk.msra.mxu0 %vm70_vm1, %v21_v10 }
   0xf   :  { %1060 = vmatmul.mubr.msk.f32.vlgmr.msra.gmra.mrb[0].mxu0 %vm63_vm0, %v1352_v8  ;;  %1182 = vmatprep.subr.bf16.mxu0 %v1181_v19  ;;  %p1283_p4 = pnand %p1282_p3, %p1276_p0 }
  0x10   :  { %1184 = vmatpush3.bf16.msra.mxu0 %v1181_v19 }
  0x11   :  { %1186 = vmatprep.subr.bf16.mxu0 %v1185_v23 }
  0x14   :  { %1188 = vmatpush3.bf16.msra.mxu0 %v1185_v23  ;;  %v61_v23 = vld [vmem:[%s1553_s2 + $0xe8] sm:$0x3] }
  0xe2   :  { %v1061_v12 = vpop.f32.mrb[0].mxu0 }
  0xe3   :  { %v140_v13 = vpop.f32.mrb[1].mxu0 }
  0xe4   :  { %v1177_v14 = vpack.c.bf16 %v1061_v12, %v140_v13 }
  0xe6   :  { %1178 = vmatprep.subr.bf16.mxu1 %v1177_v14 }
  0xe7   :  { %1180 = vmatpush3.bf16.msra.mxu1 %v1177_v14 }
  0xe8   :  { %1213 = vmatprep.subr.bf16.mxu1 %v1302_v62 }
  0xea   :  { %1067 = vmatmul.mubr.msk.f32.vlgmr.msra.gmra.mrb[0].mxu1 %vm149_vm2, %v58_v15 }
  0xeb   :  { %1131 = vmatprep.mubr.msk.f32.mxu1 %vm1303_vm4, %v1304_v63 }
 0x1bd   :  { %v1068_v18 = vpop.f32.mrb[0].mxu1 }
 0x1be   :  { %v222_v20 = vpop.f32.mrb[1].mxu1 }
 0x1bf   :  { %233 = vrot.lane.b32.xlu0 %v222_v20, %s1299_s6  ;;  %v22_v20 = vld [vmem:[%s1552_s1 + $0x40] ss:$0 sm:$0xff] }
 0x1c3   :  { %235 = vrot.lane.b32.xlu0 %v1068_v18, %s1299_s6 }
 0x1c7   :  { %510 = vrot.lane.b32.xlu0 %v140_v13, %s1300_s7 }
 0x1cb   :  { %1254 = vrot.lane.b32.xlu0 %v1253_v3, %s1299_s6 }
 0x1cf   :  { %608 = vrot.lane.b32.xlu0 %v22_v20, %s1299_s6 }
 0x231   :  { %v234_v24 = vpop.permute.xlu0 %233 }
 0x232   :  { %v239_v25 = vmul.f32 %v234_v24, %v140_v13 }
 0x234   :  { %243 = vrot.lane.b32.xlu1 %v239_v25, %s1301_s12 }
 0x235   :  { %v236_v26 = vpop.permute.xlu0 %235 }
 0x236   :  { %v240_v27 = vmul.f32 %v1061_v12, %v236_v26 }
 0x238   :  { %245 = vrot.lane.b32.xlu1 %v240_v27, %s1301_s12 }
 0x239   :  { %v511_v1 = vpop.permute.xlu0 %510 }
 0x23c   :  { %512 = vrot.lane.b32.xlu1 %v1061_v12, %s1300_s7 }
 0x23d   :  { %v1255_v4 = vpop.permute.xlu0 %1254 }
 0x23e   :  { %v1257_v13 = vunpack.i.h.bf16 %v1255_v4  ;;  %v1256_v14 = vunpack.i.l.bf16 %v1255_v4 }
 0x240   :  { %1259 = vrot.lane.b32.xlu1 %v1258_v0, %s1299_s6  ;;  %v1205_v18 = vpack.c.bf16 %v1257_v13, %v1256_v14 }
 0x241   :  { %v609_v24 = vpop.permute.xlu0 %608 }
 0x2a6   :  { %v244_v28 = vpop.permute.xlu1 %243 }
 0x2a7   :  { %1077 = vmatprep.mubr.msk.f32.mxu0 %vm247_vm3, %v244_v28 }
 0x2aa   :  { %v246_v29 = vpop.permute.xlu1 %245 }
 0x2ab   :  { %1078 = vmatmul.mubr.msk.f32.vlgmr.msra.gmra.mrb[2].mxu0 %vm247_vm3, %v246_v29 }
 0x2ac   :  { %1084 = vmatprep.mubr.msk.f32.mxu0 %vm149_vm2, %v59_v30 }
 0x2ae   :  { %v513_v3 = vpop.permute.xlu1 %512 }
 0x2b2   :  { %v1260_v15 = vpop.permute.xlu1 %1259 }
 0x2b3   :  { %v1262_v2 = vunpack.i.h.bf16 %v1260_v15  ;;  %v1261_v5 = vunpack.i.l.bf16 %v1260_v15 }
 0x2b5   :  { %v1208_v19 = vpack.c.bf16 %v1262_v2, %v1261_v5 }
 0x37e   :  { %v1079_v31 = vpop.f32.mrb[2].mxu0 }
 0x37f   :  { %v328_v32 = vsel %vm247_vm3, %v1079_v31, -inf  ;;  %v318_v33 = vpop.f32.mrb[3].mxu0 }
 0x380   :  { %v327_v34 = vsel %vm247_vm3, %v318_v33, -inf }
 0x381   :  { %v329_v35 = vmax.f32 %v327_v34, %v328_v32  ;;  %v24_v32 = vld [vmem:[%s1552_s1 + $0x18] sm:$0xff]  ;;  %v25_v34 = vld [vmem:[%s1552_s1 + $0x28] sm:$0xff] }
 0x383   :  { %v330_v36 = vrot.slane %v329_v35, 4 }
 0x385   :  { %v331_v37 = vmax.f32 %v329_v35, %v330_v36  ;;  %v26_v35 = vld [vmem:[%s1552_s1 + $0x38] sm:$0xff] }
 0x386   :  { %v1217_v36 = vpack.c.bf16 %v26_v35, %v25_v34 }
 0x387   :  { %v332_v38 = vrot.slane %v331_v37, 2 }
 0x389   :  { %v333_v39 = vmax.f32 %v331_v37, %v332_v38 }
 0x38b   :  { %v334_v40 = vrot.slane %v333_v39, 1 }
 0x38d   :  { %v335_v41 = vmax.f32 %v333_v39, %v334_v40 }
 0x38f   :  { %v336_v42 = vsub.f32 %v318_v33, %v335_v41  ;;  %v337_v43 = vsub.f32 %v1079_v31, %v335_v41  ;;  %v23_v31 = vld [vmem:[%s1552_s1 + $0x8] sm:$0xff]  ;;  %v983_v41 = vld [vmem:[%s1553_s2 + $0x81] ss:$0 sm:$0xff] }
 0x390   :  { %v1214_v33 = vpack.c.bf16 %v24_v32, %v23_v31 }
 0x391   :  { %v338_v44 = vmul.f32 1.442695, %v336_v42  ;;  %v340_v45 = vmul.f32 1.442695, %v337_v43  ;;  %v28_v43 = vld [vmem:[%s1553_s2] sm:$0xff] }
 0x392   :  { %1215 = vmatpush3.bf16.msra.mxu1 %v1214_v33 }
 0x393   :  { %1263 = vpow2.f32 %v338_v44  ;;  %1216 = vmatprep.subr.bf16.mxu1 %v1302_v62  ;;  %v29_v44 = vld [vmem:[%s1553_s2 + $0x8] sm:$0xff] }
 0x394   :  { %1265 = vpow2.f32 %v340_v45  ;;  %v984_v45 = vld [vmem:[%s1553_s2 + $0x82] ss:$0 sm:$0xff] }
 0x396   :  { %1218 = vmatpush3.bf16.msra.mxu1 %v1217_v36 }
 0x397   :  { %1219 = vmatprep.subr.bf16.mxu1 %v1302_v62 }
 0x39d   :  { %v1264_v46 = vpop.eup %1263 }
 0x39e   :  { %v1266_v47 = vpop.eup %1265 }
 0x39f   :  { %v1189_v48 = vpack.c.bf16 %v1266_v47, %v1264_v46 }
 0x3a1   :  { %1190 = vmatprep.subr.bf16.mxu0 %v1189_v48 }
 0x3a2   :  { %1192 = vmatpush3.bf16.msra.mxu0 %v1189_v48 }
 0x3a3   :  { %1194 = vmatprep.subr.bf16.mxu0 %v1193_v52 }
 0x3a5   :  { %1085 = vmatmul.mubr.msk.f32.vlgmr.msra.gmra.mrb[4].mxu0 %vm149_vm2, %v60_v49  ;;  %v30_v49 = vld [vmem:[%s1553_s2 + $0x10] sm:$0xff] }
 0x3a6   :  { %1196 = vmatpush3.bf16.msra.mxu0 %v1193_v52  ;;  %v1223_v51 = vpack.c.bf16 %v31_v50, %v30_v49  ;;  %v32_v52 = vld [vmem:[%s1553_s2 + $0x20] sm:$0xff] }
 0x3a7   :  { %1198 = vmatprep.subr.bf16.mxu0 %v1197_v55  ;;  %v1226_v54 = vpack.c.bf16 %v33_v53, %v32_v52 }
 0x3aa   :  { %1200 = vmatpush3.bf16.msra.mxu0 %v1197_v55  ;;  %v34_v55 = vld [vmem:[%s1553_s2 + $0x30] sm:$0xff] }
 0x3ab   :  { %1201 = vmatprep.subr.bf16.mxu0 %v1302_v62 }
 0x478   :  { %v1086_v56 = vpop.f32.mrb[4].mxu0 }
 0x479   :  { %1267 = vrcp.f32 %v1086_v56  ;;  %v414_v57 = vpop.f32.mrb[5].mxu0  ;;  %v35_v56 = vld [vmem:[%s1553_s2 + $0x38] sm:$0xff] }
 0x47a   :  { %1269 = vrcp.f32 %v414_v57  ;;  %v1229_v57 = vpack.c.bf16 %v35_v56, %v34_v55 }
 0x483   :  { %v1268_v58 = vpop.eup %1267 }
 0x484   :  { %v1270_v59 = vpop.eup %1269  ;;  %v426_v61 = vmul.f32 %v1268_v58, %v1266_v47  ;;  %v1220_v47 = vpack.c.bf16 %v29_v44, %v28_v43  ;;  %v36_v58 = vld [vmem:[%s1553_s2 + $0x40] sm:$0xff] }
 0x485   :  { %v425_v60 = vmul.f32 %v1270_v59, %v1264_v46  ;;  %v37_v59 = vld [vmem:[%s1553_s2 + $0x48] sm:$0xff] }
 0x487   :  { %1095 = vmatprep.mubr.msk.f32.mxu0 %vm247_vm3, %v425_v60  ;;  %v1232_v60 = vpack.c.bf16 %v37_v59, %v36_v58 }
 0x488   :  { %1096 = vmatmul.mubr.msk.f32.vlgmr.msra.gmra.mrb[6].mxu0 %vm247_vm3, %v426_v61  ;;  %v38_v61 = vld [vmem:[%s1553_s2 + $0x50] sm:$0xff] }
 0x489   :  { %1102 = vmatprep.mubr.msk.f32.mxu0 %vm1303_vm4, %v1304_v63 }
 0x55b   :  { %v1097_v7 = vpop.f32.mrb[6].mxu0 }
 0x55c   :  { %v517_v10 = vmul.f32 %v1097_v7, %v513_v3  ;;  %v499_v11 = vpop.f32.mrb[7].mxu0  ;;  %v41_v3 = vld [vmem:[%s1553_s2 + $0x68] sm:$0xff]  ;;  %v42_v7 = vld [vmem:[%s1553_s2 + $0x70] sm:$0xff] }
 0x55d   :  { %v516_v12 = vmul.f32 %v511_v1, %v499_v11  ;;  %v40_v1 = vld [vmem:[%s1553_s2 + $0x60] sm:$0xff] }
 0x55e   :  { %v1238_v4 = vpack.c.bf16 %v41_v3, %v40_v1 }
 0x55f   :  { %v1202_v16 = vpack.c.bf16 %v517_v10, %v516_v12  ;;  %v43_v10 = vld [vmem:[%s1553_s2 + $0x78] sm:$0xff]  ;;  %v27_v12 = vld [vmem:[%s1552_s1 + $0x48] ss:$0 sm:$0xff] }
 0x560   :  { %v1241_v11 = vpack.c.bf16 %v43_v10, %v42_v7 }
 0x561   :  { %1203 = vmatpush3.bf16.msra.mxu0 %v1202_v16 }
 0x562   :  { %1204 = vmatprep.subr.bf16.mxu0 %v1302_v62 }
 0x564   :  { %1103 = vmatmul.mubr.msk.f32.vlgmr.msra.gmra.mrb[8].mxu0 %vm149_vm2, %v62_v17 }
 0x565   :  { %1206 = vmatpush3.bf16.msra.mxu0 %v1205_v18  ;;  %1113 = vmatprep.mubr.msk.f32.mxu0 %vm1303_vm4, %v1304_v63 }
 0x566   :  { %1207 = vmatprep.subr.bf16.mxu0 %v1302_v62 }
 0x569   :  { %1209 = vmatpush3.bf16.msra.mxu0 %v1208_v19 }
 0x56a   :  { %1210 = vmatprep.subr.bf16.mxu0 %v1302_v62 }
 0x637   :  { %v587_v21 = vpop.f32.mrb[8].mxu0 }
 0x638   :  { %v1104_v22 = vpop.f32.mrb[9].mxu0  ;;  %1114 = vmatmul.mubr.msk.f32.vlgmr.msra.gmra.mrb[10].mxu0 %vm247_vm3, %v587_v21 }
 0x639   :  { %1212 = vmatpush3.bf16.msra.mxu0 %v1211_v9  ;;  %1120 = vmatprep.mubr.msk.f32.mxu0 %vm1303_vm4, %v1304_v63 }
 0x640   :  { %1121 = vmatmul.mubr.msk.f32.vlgmr.msra.gmra.mrb[10].mxu0 %vm149_vm2, %v61_v23 }
 0x713   :  { %v753_v25 = vpop.f32.mrb[10].mxu0 }
 0x714   :  { %v1243_v26 = vadd.f32 %v753_v25, %v609_v24  ;;  %v1122_v27 = vpop.f32.mrb[11].mxu0 }
 0x716   :  { %v758_v28 = vsel %vm757_vm5, %v1243_v26, 0.0 }
 0x717   :  { %759 = vadd.xlane.f32.xlu1 %v758_v28 }
 0x7a4   :  { %v760_v29 = vpop.xlane.xlu1 %759 }
 0x7a5   :  { %v762_v6 = vmul.f32 0.03125, %v760_v29  ;;  %v987_v29 = vld [vmem:[%s1553_s2 + $0x83] ss:$0 sm:$0xff] }
 0x7a7   :  { %v763_v8 = vsub.f32 %v1243_v26, %v762_v6 }
 0x7a9   :  { %v764_v9 = vmul.f32 %v763_v8, %v763_v8 }
 0x7ab   :  { %v765_v30 = vsel %vm757_vm5, %v764_v9, 0.0 }
 0x7ac   :  { %766 = vadd.xlane.f32.xlu0 %v765_v30 }
 0x839   :  { %v767_v37 = vpop.xlane.xlu0 %766 }
 0x83a   :  { %v768_v38 = vmul.f32 0.03125, %v767_v37 }
 0x83c   :  { %v769_v39 = vadd.f32 1e-05, %v768_v38 }
 0x83e   :  { %1271 = vrsqrt.f32 %v769_v39 }
 0x848   :  { %v1272_v40 = vpop.eup %1271 }
 0x849   :  { %v771_v42 = vmul.f32 %v1272_v40, %v763_v8  ;;  %v988_v8 = vld [vmem:[%s1553_s2 + $0x84] ss:$0 sm:$0xff] }
 0x84b   :  { %v776_v46 = vmul.f32 %v983_v41, %v771_v42 }
 0x84d   :  { %v781_v48 = vadd.f32 %v984_v45, %v776_v46 }
 0x84f   :  { %1132 = vmatmul.mubr.msk.f32.vlgmr.msra.gmra.mrb[2].mxu1 %vm247_vm3, %v781_v48 }
 0x850   :  { %1221 = vmatpush3.bf16.msra.mxu1 %v1220_v47  ;;  %1166 = vmatprep.mubr.msk.f32.mxu1 %vm1303_vm4, %v1304_v63  ;;  %v39_v63 = vld [vmem:[%s1553_s2 + $0x58] sm:$0xff] }
 0x851   :  { %1222 = vmatprep.subr.bf16.mxu1 %v1302_v62  ;;  %v1235_v0 = vpack.c.bf16 %v39_v63, %v38_v61 }
 0x854   :  { %1224 = vmatpush3.bf16.msra.mxu1 %v1223_v51 }
 0x855   :  { %1225 = vmatprep.subr.bf16.mxu1 %v1302_v62 }
 0x858   :  { %1227 = vmatpush3.bf16.msra.mxu1 %v1226_v54 }
 0x859   :  { %1228 = vmatprep.subr.bf16.mxu1 %v1302_v62 }
 0x85c   :  { %1230 = vmatpush3.bf16.msra.mxu1 %v1229_v57 }
 0x85d   :  { %1231 = vmatprep.subr.bf16.mxu1 %v1302_v62 }
 0x860   :  { %1233 = vmatpush3.bf16.msra.mxu1 %v1232_v60 }
 0x861   :  { %1234 = vmatprep.subr.bf16.mxu1 %v1302_v62 }
 0x864   :  { %1236 = vmatpush3.bf16.msra.mxu1 %v1235_v0 }
 0x865   :  { %1237 = vmatprep.subr.bf16.mxu1 %v1302_v62 }
 0x868   :  { %1239 = vmatpush3.bf16.msra.mxu1 %v1238_v4 }
 0x869   :  { %1240 = vmatprep.subr.bf16.mxu1 %v1302_v62  ;;  %v986_v62 = vld [vmem:[%s1553_s2 + $0x80] ss:$0 sm:$0xff] }
 0x86c   :  { %1242 = vmatpush3.bf16.msra.mxu1 %v1241_v11 }
 0x922   :  { %v851_v13 = vpop.f32.mrb[2].mxu1 }
 0x923   :  { %v852_v14 = vadd.f32 %v851_v13, %v27_v12  ;;  %v1133_v15 = vpop.f32.mrb[3].mxu1 }
 0x925   :  { %v855_v16 = vmax.f32 %v852_v14, 0.0 }
 0x927   :  { %1167 = vmatmul.mubr.f32.vlgmr.msra.gmra.mrb[4].mxu1 %v855_v16 }
 0x9fa   :  { %v926_v17 = vpop.f32.mrb[4].mxu1 }
 0x9fb   :  { %v927_v18 = vadd.f32 %v986_v62, %v926_v17  ;;  %v1168_v2 = vpop.f32.mrb[5].mxu1 }
 0x9fd   :  { %v930_v5 = vadd.f32 %v927_v18, %v781_v48 }
 0x9ff   :  { %v931_v19 = vsel %vm757_vm5, %v930_v5, 0.0 }
 0xa00   :  { %932 = vadd.xlane.f32.xlu0 %v931_v19 }
 0xa8d   :  { %v933_v20 = vpop.xlane.xlu0 %932 }
 0xa8e   :  { %v934_v21 = vmul.f32 0.03125, %v933_v20 }
 0xa90   :  { %v935_v22 = vsub.f32 %v930_v5, %v934_v21 }
 0xa92   :  { %v936_v23 = vmul.f32 %v935_v22, %v935_v22 }
 0xa94   :  { %v937_v24 = vsel %vm757_vm5, %v936_v23, 0.0 }
 0xa95   :  { %938 = vadd.xlane.f32.xlu1 %v937_v24 }
 0xb22   :  { %v939_v25 = vpop.xlane.xlu1 %938 }
 0xb23   :  { %v940_v26 = vmul.f32 0.03125, %v939_v25 }
 0xb25   :  { %v941_v27 = vadd.f32 1e-05, %v940_v26 }
 0xb27   :  { %1273 = vrsqrt.f32 %v941_v27 }
 0xb31   :  { %v1274_v28 = vpop.eup %1273 }
 0xb32   :  { %v943_v6 = vmul.f32 %v1274_v28, %v935_v22 }
 0xb34   :  { %v948_v9 = vmul.f32 %v987_v29, %v943_v6 }
 0xb36   :  { %v953_v30 = vadd.f32 %v988_v8, %v948_v9 }
 0xb38   :  { %954 = vst.msk [vmem:[#allocation2] sm:$0x3] %vm757_vm5, %v953_v30 }
 0xb39   :  { %1286 = shalt.err (!%p1283_p4)
}
 0xb3a   :  { %s1287_s30 = scalar_lea.hbm %s1554_s3, 32 }
 0xb3b   :  { %p1288_p5 = scmp.ne.s32.totalorder %s1554_s3, %s1287_s30  ;;  %p1291_p6 = scmp.lt.u32.totalorder %s1287_s30, %s1554_s3 }
 0xb3d   :  { %p1293_p7 = pnand %p1291_p6, %p1288_p5 }
 0xb3f   :  { %1296 = shalt.err (!%p1293_p7)
}
 0xb40   :  { %964 = dma.vmem_to_hbm [thread:$0]  %s962_s26, 32, %s1554_s3, [#allocation3]  }
 0xb41   :  { %1297 = dma.done.wait [#allocation3], 32  }
 0xb42   :  { %1298 = vsyncadd [#allocation3], 4294967264 }
 0xb43   :  { %968 = vsyncpa [#allocation3], 1 }

</bundles_post_ra>
